<compile_context>
chip_gen: v7x
topology: tpu7x:2x2x1
jax: 0.10.0
libtpu: 0.0.40
codegen_flags: <defaults>
</compile_context>

<pallas_src>
import functools

import jax
import jax.numpy as jnp
from jax import lax
from jax.experimental import pallas as pl
from jax.experimental.pallas import tpu as pltpu


def _round_up(v, m):
    return (v + m - 1) // m * m


def _pick_row_tile(n, c_pad, budget_bytes=32 * 1024 * 1024):
    """Largest power-of-two row tile whose live VMEM footprint fits the budget."""
    tr = 256
    while tr > 8:
        n_pad = _round_up(n, tr)
        live = (3 * tr * n_pad * 4        # dist^2 slab + where-selected copies
                + 2 * tr * c_pad * 4      # double-buffered x row tile
                + n_pad * c_pad * 4)      # resident full x
        if live <= budget_bytes:
            break
        tr //= 2
    return min(max(tr, 8), _round_up(n, 8))


def _triplet_kernel(xr_ref, xa_ref, sqc_ref, sqr_ref, lblc_ref, lblr_ref,
                    vldc_ref, vldr_ref, out_ref, *, margin, scale, precision):
    # Gram block on the MXU: (TR, C) @ (N, C)^T -> (TR, N), f32 accumulate.
    gram = lax.dot_general(
        xr_ref[...], xa_ref[...],
        dimension_numbers=(((1,), (1,)), ((), ())),
        preferred_element_type=jnp.float32,
        precision=precision)

    # Squared pairwise distances for this row block (norms precomputed in f32).
    d2 = sqc_ref[...] + sqr_ref[...] - 2.0 * gram          # (TR, N) f32

    same = lblc_ref[...] == lblr_ref[...]                  # (TR, N) bool
    valid_col = vldr_ref[...] > 0.5                        # (1, N)  bool
    pos = jnp.logical_and(same, valid_col)                 # diag self-pair kept
    neg = jnp.logical_and(jnp.logical_not(same), valid_col)

    # Reduce over d^2, take sqrt only on the (TR, 1) results (monotone).
    pos_max_sq = jnp.max(jnp.where(pos, d2, -jnp.inf), axis=-1, keepdims=True)
    neg_min_sq = jnp.min(jnp.where(neg, d2, jnp.inf), axis=-1, keepdims=True)
    pos_d = jnp.sqrt(jnp.maximum(pos_max_sq, 1e-16))
    neg_d = jnp.sqrt(jnp.maximum(neg_min_sq, 1e-16))

    # margin_ranking_loss(neg_d, pos_d, y=1): max(0, pos_d - neg_d + margin).
    # Padded rows are zeroed before the partial sum.
    per = jnp.maximum(pos_d - neg_d + margin, 0.0) * vldc_ref[...]   # (TR, 1)
    partial = jnp.sum(per) * scale

    # Lane-dense (1, 128) partial-sum slab: value in lane 0, zeros elsewhere.
    lane = lax.broadcasted_iota(jnp.int32, (1, 128), 1)
    out_ref[...] = jnp.where(lane == 0, partial, 0.0)


def triplet_semihard_loss(x, target, *, margin=0.0, size_average=True,
                          row_tile=None, use_bf16_gram=None):
    """TripletSemihardLoss.forward: x (N, C) float, target (N,) int -> scalar."""
    x = jnp.asarray(x, jnp.float32)
    target = jnp.asarray(target)
    n, c = x.shape

    c_pad = _round_up(c, 128)                 # lane-aligned contraction dim
    if row_tile is None:
        tr = _pick_row_tile(n, c_pad)
    else:
        tr = min(max(8, _round_up(int(row_tile), 8)), _round_up(n, 8))
    n_pad = _round_up(n, tr)
    grid = n_pad // tr

    # Zero-padding changes neither norms nor inner products.
    x_pad = jnp.zeros((n_pad, c_pad), jnp.float32).at[:n, :c].set(x)

    # Precompute f32 squared norms in both layouts (no in-kernel transpose).
    sq = jnp.sum(x_pad * x_pad, axis=1)
    sq_col = sq.reshape(n_pad, 1)
    sq_row = sq.reshape(1, n_pad)

    lbl = jnp.full((n_pad,), -1, jnp.int32).at[:n].set(target.astype(jnp.int32))
    lbl_col = lbl.reshape(n_pad, 1)
    lbl_row = lbl.reshape(1, n_pad)

    valid = (jnp.arange(n_pad) < n).astype(jnp.float32)
    valid_col = valid.reshape(n_pad, 1)
    valid_row = valid.reshape(1, n_pad)

    # bf16 Gram only in the MXU-bound regime; element-wise math stays f32.
    if use_bf16_gram is None:
        use_bf16_gram = c_pad >= 256
    if use_bf16_gram:
        x_mm = x_pad.astype(jnp.bfloat16)
        precision = lax.Precision.DEFAULT
    else:
        x_mm = x_pad
        precision = lax.Precision.HIGHEST

    kernel = functools.partial(
        _triplet_kernel,
        margin=float(margin),
        scale=(1.0 / n) if size_average else 1.0,
        precision=precision)

    out = pl.pallas_call(
        kernel,
        out_shape=jax.ShapeDtypeStruct((1, grid * 128), jnp.float32),
        grid=(grid,),
        in_specs=[
            pl.BlockSpec((tr, c_pad), lambda i: (i, 0)),      # x row tile (pipelined)
            pl.BlockSpec((n_pad, c_pad), lambda i: (0, 0)),   # full x (resident)
            pl.BlockSpec((tr, 1), lambda i: (i, 0)),          # |x_i|^2 (rows)
            pl.BlockSpec((1, n_pad), lambda i: (0, 0)),       # |x_j|^2 (cols)
            pl.BlockSpec((tr, 1), lambda i: (i, 0)),          # labels (rows)
            pl.BlockSpec((1, n_pad), lambda i: (0, 0)),       # labels (cols)
            pl.BlockSpec((tr, 1), lambda i: (i, 0)),          # row validity
            pl.BlockSpec((1, n_pad), lambda i: (0, 0)),       # col validity
        ],
        out_specs=pl.BlockSpec((1, 128), lambda i: (0, i)),
        compiler_params=pltpu.CompilerParams(
            dimension_semantics=("parallel",),
            vmem_limit_bytes=48 * 1024 * 1024),
    )(x_mm, x_mm, sq_col, sq_row, lbl_col, lbl_row, valid_col, valid_row)

    return jnp.sum(out)


def _reference(x, target, margin=0.0, size_average=True):
    """Pure-JAX mirror of the PyTorch forward, for a sanity check."""
    lbl = target.astype(jnp.int32)
    same_id = (lbl[:, None] == lbl[None, :]).astype(jnp.float32)
    sq = jnp.sum(x ** 2, axis=1, keepdims=True)
    gram = jnp.matmul(x, x.T, precision=lax.Precision.HIGHEST)
    dist_sq = sq + sq.T - 2.0 * gram
    dist = jnp.sqrt(jnp.maximum(dist_sq, 1e-16))
    pos_max = jnp.max(dist - 1e6 * (1.0 - same_id), axis=-1)
    neg_min = jnp.min(dist + 1e6 * same_id, axis=-1)
    per = jnp.maximum(pos_max - neg_min + margin, 0.0)
    return jnp.mean(per) if size_average else jnp.sum(per)


if __name__ == "__main__":
    key = jax.random.PRNGKey(0)
    kx, kl = jax.random.split(key)

    N, C = 8, 32
    x = jax.random.normal(kx, (N, C), dtype=jnp.float32)
    # Labels in {0,1,2,3} so most samples have both positives and negatives.
    target = jax.random.randint(kl, (N,), 0, 4, dtype=jnp.int32)

    loss = triplet_semihard_loss(x, target, margin=0.0, size_average=True)
    loss = jax.block_until_ready(loss)

    ref = _reference(x, target, margin=0.0, size_average=True)
    assert jnp.allclose(loss, ref, atol=1e-4, rtol=1e-4), (loss, ref)

    print("KERNEL_OK")
</pallas_src>

<mosaic_0001>
module attributes {stable_mosaic.version = 11 : i64} {
  func.func @_triplet_kernel(%arg0: i32, %arg1: memref<8x128xf32, #tpu.memory_space<vmem>>, %arg2: memref<8x128xf32, #tpu.memory_space<vmem>>, %arg3: memref<8x1xf32, #tpu.memory_space<vmem>>, %arg4: memref<1x8xf32, #tpu.memory_space<vmem>>, %arg5: memref<8x1xi32, #tpu.memory_space<vmem>>, %arg6: memref<1x8xi32, #tpu.memory_space<vmem>>, %arg7: memref<8x1xf32, #tpu.memory_space<vmem>>, %arg8: memref<1x8xf32, #tpu.memory_space<vmem>>, %arg9: memref<1x128xf32, #tpu.memory_space<vmem>>) attributes {dimension_semantics = [#tpu.dimension_semantics<parallel>], iteration_bounds = array<i64: 1>, scalar_prefetch = 0 : i64, scratch_operands = 0 : i64, tpu.core_type = #tpu.core_type<tc>, window_params = [{transform_indices = @transform_0, window_bounds = array<i64: 8, 128>}, {pipeline_mode = #tpu.pipeline_mode<synchronous>, transform_indices = @transform_1, window_bounds = array<i64: 8, 128>}, {transform_indices = @transform_2, window_bounds = array<i64: 8, 1>}, {pipeline_mode = #tpu.pipeline_mode<synchronous>, transform_indices = @transform_3, window_bounds = array<i64: 1, 8>}, {transform_indices = @transform_4, window_bounds = array<i64: 8, 1>}, {pipeline_mode = #tpu.pipeline_mode<synchronous>, transform_indices = @transform_5, window_bounds = array<i64: 1, 8>}, {transform_indices = @transform_6, window_bounds = array<i64: 8, 1>}, {pipeline_mode = #tpu.pipeline_mode<synchronous>, transform_indices = @transform_7, window_bounds = array<i64: 1, 8>}, {transform_indices = @transform_8, window_bounds = array<i64: 1, 128>}]} {
    %c0 = arith.constant 0 : index
    %c0_0 = arith.constant 0 : index
    %0 = vector.load %arg1[%c0, %c0_0] : memref<8x128xf32, #tpu.memory_space<vmem>>, vector<8x128xf32>
    %c0_1 = arith.constant 0 : index
    %c0_2 = arith.constant 0 : index
    %1 = vector.load %arg2[%c0_1, %c0_2] : memref<8x128xf32, #tpu.memory_space<vmem>>, vector<8x128xf32>
    %cst = arith.constant dense<0.000000e+00> : vector<8x8xf32>
    %2 = tpu.matmul %0, %1, %cst {dimension_numbers = #tpu.dot_dimension_numbers<[1], [1], [0], [0], [0, 0, 1, 0], [], []>, precision = #tpu.contract_precision<fp32>} : vector<8x128xf32>, vector<8x128xf32>, vector<8x8xf32> -> vector<8x8xf32>
    %c0_3 = arith.constant 0 : index
    %c0_4 = arith.constant 0 : index
    %3 = vector.load %arg3[%c0_3, %c0_4] : memref<8x1xf32, #tpu.memory_space<vmem>>, vector<8x1xf32>
    %c0_5 = arith.constant 0 : index
    %c0_6 = arith.constant 0 : index
    %4 = vector.load %arg4[%c0_5, %c0_6] : memref<1x8xf32, #tpu.memory_space<vmem>>, vector<1x8xf32>
    %5 = vector.broadcast %3 : vector<8x1xf32> to vector<8x8xf32>
    %6 = vector.broadcast %4 : vector<1x8xf32> to vector<8x8xf32>
    %7 = arith.addf %5, %6 : vector<8x8xf32>
    %cst_7 = arith.constant 2.000000e+00 : f32
    %8 = vector.broadcast %cst_7 : f32 to vector<8x8xf32>
    %9 = arith.mulf %8, %2 : vector<8x8xf32>
    %10 = arith.subf %7, %9 : vector<8x8xf32>
    %c0_8 = arith.constant 0 : index
    %c0_9 = arith.constant 0 : index
    %11 = vector.load %arg5[%c0_8, %c0_9] : memref<8x1xi32, #tpu.memory_space<vmem>>, vector<8x1xi32>
    %c0_10 = arith.constant 0 : index
    %c0_11 = arith.constant 0 : index
    %12 = vector.load %arg6[%c0_10, %c0_11] : memref<1x8xi32, #tpu.memory_space<vmem>>, vector<1x8xi32>
    %13 = vector.broadcast %11 : vector<8x1xi32> to vector<8x8xi32>
    %14 = vector.broadcast %12 : vector<1x8xi32> to vector<8x8xi32>
    %15 = arith.cmpi eq, %13, %14 : vector<8x8xi32>
    %c0_12 = arith.constant 0 : index
    %c0_13 = arith.constant 0 : index
    %16 = vector.load %arg8[%c0_12, %c0_13] : memref<1x8xf32, #tpu.memory_space<vmem>>, vector<1x8xf32>
    %cst_14 = arith.constant 5.000000e-01 : f32
    %17 = vector.broadcast %cst_14 : f32 to vector<1x8xf32>
    %18 = arith.cmpf ogt, %16, %17 : vector<1x8xf32>
    %19 = vector.broadcast %18 : vector<1x8xi1> to vector<8x8xi1>
    %20 = arith.andi %15, %19 : vector<8x8xi1>
    %cst_15 = arith.constant dense<true> : vector<8x8xi1>
    %21 = arith.xori %15, %cst_15 : vector<8x8xi1>
    %22 = vector.broadcast %18 : vector<1x8xi1> to vector<8x8xi1>
    %23 = arith.andi %21, %22 : vector<8x8xi1>
    %cst_16 = arith.constant 0xFF800000 : f32
    %24 = vector.broadcast %cst_16 : f32 to vector<8x8xf32>
    %25 = arith.select %20, %10, %24 : vector<8x8xi1>, vector<8x8xf32>
    %cst_17 = arith.constant dense<0xFF800000> : vector<8xf32>
    %26 = vector.multi_reduction <maximumf>, %25, %cst_17 [1] : vector<8x8xf32> to vector<8xf32>
    %27 = vector.shape_cast %26 : vector<8xf32> to vector<8x1xf32>
    %cst_18 = arith.constant 0x7F800000 : f32
    %28 = vector.broadcast %cst_18 : f32 to vector<8x8xf32>
    %29 = arith.select %23, %10, %28 : vector<8x8xi1>, vector<8x8xf32>
    %cst_19 = arith.constant dense<0x7F800000> : vector<8xf32>
    %30 = vector.multi_reduction <minimumf>, %29, %cst_19 [1] : vector<8x8xf32> to vector<8xf32>
    %31 = vector.shape_cast %30 : vector<8xf32> to vector<8x1xf32>
    %cst_20 = arith.constant 1.000000e-16 : f32
    %32 = vector.broadcast %cst_20 : f32 to vector<8x1xf32>
    %33 = arith.maximumf %27, %32 : vector<8x1xf32>
    %34 = math.sqrt %33 : vector<8x1xf32>
    %cst_21 = arith.constant 1.000000e-16 : f32
    %35 = vector.broadcast %cst_21 : f32 to vector<8x1xf32>
    %36 = arith.maximumf %31, %35 : vector<8x1xf32>
    %37 = math.sqrt %36 : vector<8x1xf32>
    %38 = arith.subf %34, %37 : vector<8x1xf32>
    %cst_22 = arith.constant 0.000000e+00 : f32
    %39 = vector.broadcast %cst_22 : f32 to vector<8x1xf32>
    %40 = arith.addf %38, %39 : vector<8x1xf32>
    %cst_23 = arith.constant 0.000000e+00 : f32
    %41 = vector.broadcast %cst_23 : f32 to vector<8x1xf32>
    %42 = arith.maximumf %40, %41 : vector<8x1xf32>
    %c0_24 = arith.constant 0 : index
    %c0_25 = arith.constant 0 : index
    %43 = vector.load %arg7[%c0_24, %c0_25] : memref<8x1xf32, #tpu.memory_space<vmem>>, vector<8x1xf32>
    %44 = arith.mulf %42, %43 : vector<8x1xf32>
    %45 = vector.shape_cast %44 : vector<8x1xf32> to vector<1x8x1xf32>
    %cst_26 = arith.constant dense<0.000000e+00> : vector<1xf32>
    %46 = vector.multi_reduction <add>, %45, %cst_26 [1, 2] : vector<1x8x1xf32> to vector<1xf32>
    %47 = vector.shape_cast %46 : vector<1xf32> to vector<1x1x1xf32>
    %48 = vector.extract %47[0, 0, 0] : f32 from vector<1x1x1xf32>
    %cst_27 = arith.constant 1.250000e-01 : f32
    %49 = arith.mulf %48, %cst_27 : f32
    %50 = tpu.iota {dimensions = array<i32: 1>} : vector<1x128xi32>
    %c0_i32 = arith.constant 0 : i32
    %51 = vector.broadcast %c0_i32 : i32 to vector<1x128xi32>
    %52 = arith.cmpi eq, %50, %51 : vector<1x128xi32>
    %cst_28 = arith.constant 0.000000e+00 : f32
    %53 = vector.broadcast %49 : f32 to vector<1x128xf32>
    %54 = vector.broadcast %cst_28 : f32 to vector<1x128xf32>
    %55 = arith.select %52, %53, %54 : vector<1x128xi1>, vector<1x128xf32>
    %c0_29 = arith.constant 0 : index
    %c0_30 = arith.constant 0 : index
    %56 = vector.load %arg9[%c0_29, %c0_30] : memref<1x128xf32, #tpu.memory_space<vmem>>, vector<1x128xf32>
    tpu.vector_store %arg9[%c0_29, %c0_30], %55 {strides = array<i32>} : memref<1x128xf32, #tpu.memory_space<vmem>>, vector<1x128xf32>,
    return
  }
  func.func @transform_0(%arg0: i32) -> (i32, i32) {
    %c0_i32 = arith.constant 0 : i32
    %c0_i32_0 = arith.constant 0 : i32
    return %arg0, %c0_i32 : i32, i32
  }
  func.func @transform_1(%arg0: i32) -> (i32, i32) {
    %c0_i32 = arith.constant 0 : i32
    %c0_i32_0 = arith.constant 0 : i32
    %c0_i32_1 = arith.constant 0 : i32
    return %c0_i32, %c0_i32_0 : i32, i32
  }
  func.func @transform_2(%arg0: i32) -> (i32, i32) {
    %c0_i32 = arith.constant 0 : i32
    %c0_i32_0 = arith.constant 0 : i32
    return %arg0, %c0_i32 : i32, i32
  }
  func.func @transform_3(%arg0: i32) -> (i32, i32) {
    %c0_i32 = arith.constant 0 : i32
    %c0_i32_0 = arith.constant 0 : i32
    %c0_i32_1 = arith.constant 0 : i32
    return %c0_i32, %c0_i32_0 : i32, i32
  }
  func.func @transform_4(%arg0: i32) -> (i32, i32) {
    %c0_i32 = arith.constant 0 : i32
    %c0_i32_0 = arith.constant 0 : i32
    return %arg0, %c0_i32 : i32, i32
  }
  func.func @transform_5(%arg0: i32) -> (i32, i32) {
    %c0_i32 = arith.constant 0 : i32
    %c0_i32_0 = arith.constant 0 : i32
    %c0_i32_1 = arith.constant 0 : i32
    return %c0_i32, %c0_i32_0 : i32, i32
  }
  func.func @transform_6(%arg0: i32) -> (i32, i32) {
    %c0_i32 = arith.constant 0 : i32
    %c0_i32_0 = arith.constant 0 : i32
    return %arg0, %c0_i32 : i32, i32
  }
  func.func @transform_7(%arg0: i32) -> (i32, i32) {
    %c0_i32 = arith.constant 0 : i32
    %c0_i32_0 = arith.constant 0 : i32
    %c0_i32_1 = arith.constant 0 : i32
    return %c0_i32, %c0_i32_0 : i32, i32
  }
  func.func @transform_8(%arg0: i32) -> (i32, i32) {
    %c0_i32 = arith.constant 0 : i32
    %c0_i32_0 = arith.constant 0 : i32
    return %c0_i32, %arg0 : i32, i32
  }
}

</mosaic_0001>

<bundles_post_ra>
// kernel: tpu_custom_call.1
= control target key start
LH: loop header
LB: loop body
LE: loop exit
PB: predicated region body
PF: predicated region fallthrough
CT: control target
= control target key end

     0   :  { %v666_v2 = vmov 0.0   ;;  %vm667_vm0 = vmmov 0   ;;  %s760_s0 = inlined_call_operand.vmem [shape: f32[8,128], index: 0, kind: input, shape index: {}]   ;;  %s761_s1 = inlined_call_operand.vmem [shape: f32[8,128], index: 1, kind: input, shape index: {}]   ;;  %s762_s2 = inlined_call_operand.vmem [shape: f32[8,1], index: 2, kind: input, shape index: {}]   ;;  %s763_s3 = inlined_call_operand.vmem [shape: f32[1,8], index: 3, kind: input, shape index: {}]   ;;  %s764_s4 = inlined_call_operand.vmem [shape: s32[8,1], index: 4, kind: input, shape index: {}]   ;;  %s765_s5 = inlined_call_operand.vmem [shape: s32[1,8], index: 5, kind: input, shape index: {}]   ;;  %s766_s6 = inlined_call_operand.vmem [shape: f32[8,1], index: 6, kind: input, shape index: {}]   ;;  %s767_s7 = inlined_call_operand.vmem [shape: f32[1,8], index: 7, kind: input, shape index: {}]   ;;  %s768_s8 = inlined_call_operand.hbm [shape: f32[1,128], index: 8, kind: output, shape index: {}]  }
   0x1   :  { %v31_v0 = vld [vmem:[%s761_s1] sm:$0xff]  ;;  %606 = vmatprep.subr.mxu0 %v666_v2  ;;  %591 = vmatprep.subr.mxu1 %v666_v2 }
   0x2   :  { %v30_v1 = vld [vmem:[%s760_s0] sm:$0xff]  ;;  %v33_v3 = vand.u32 4294901760, %v31_v0  ;;  %608 = vmatprep.mubr.msk.f32.mxu0 %vm667_vm0, %v666_v2  ;;  %593 = vmatprep.mubr.msk.f32.mxu1 %vm667_vm0, %v666_v2 }
   0x3   :  { %v98_v4 = vand.u32 4294901760, %v30_v1 }
   0x4   :  { %13 = vsyncpa [#allocation3], 0  ;;  %v110_v5 = vsub.f32 %v31_v0, %v33_v3  ;;  %607 = vmatpush3.xpose.msra.mxu0 %v33_v3  ;;  %592 = vmatpush3.xpose.msra.mxu1 %v33_v3  ;;  %v478_v7 = vld [vmem:[%s762_s2] sm:$0xff]  ;;  %v668_v10 = vmov 0   ;;  %v507_v16 = vlaneseq  ;;  %vm669_vm4 = vmmov 1   ;;  %s670_s15 = smov [#allocation2]  }
   0x5   :  { %v99_v6 = vsub.f32 %v30_v1, %v98_v4  ;;  %596 = vmatprep.subr.mxu1 %v666_v2  ;;  %611 = vmatprep.subr.mxu0 %v666_v2  ;;  %v494_v13 = vld [vmem:[%s764_s4] sm:$0xff]  ;;  %vm516_vm7 = vcmask 64512   ;;  %vm545_vm13 = vcmask 7168   ;;  %s569_s16 = sshll.u32 %s670_s15, 4  ;;  %s570_s16 = int_to_ptr.vmem [resolvable:$true] %s569_s16 }
   0x6   :  { %v111_v9 = vand.u32 4294901760, %v110_v5  ;;  %637 = vset.pattern.permute.xlu0 %v668_v10  ;;  %v504_v17 = vld [vmem:[%s767_s7] sm:$0x1]  ;;  %v508_v18 = vshrl.u32 %v507_v16, 7  ;;  %v558_v0 = vand.u32 127, %v507_v16  ;;  %s646_s18 = scalar_lea.vmem %s570_s16, 32  ;;  %p647_p1 = scmp.lt.s32.totalorder %s570_s16, %s570_s16 }
   0x7   :  { %v100_v8 = vand.u32 4294901760, %v99_v6  ;;  %482 = vperm.xlu0 %637, %v478_v7   ;;  %vm505_vm1 = vcmp.gt.f32.partialorder %v504_v17, 0.5  ;;  %v578_v24 = vld [vmem:[%s765_s5] ss:$0 sm:$0xff] }
   0x8   :  { %v112_v12 = vsub.f32 %v110_v5, %v111_v9  ;;  %v509_v20 = vsub.s32 0, %v508_v18  ;;  %v506_v21 = vsel %vm505_vm1, 1, %v668_v10  ;;  %v577_v27 = vld [vmem:[%s763_s3] ss:$0 sm:$0xff]  ;;  %vm559_vm14 = vcmp.eq.s32.totalorder %v558_v0, 0 }
   0x9   :  { %609 = vmatmul.mubr.f32.vlgmr.msra.gmra.mrb[0].mxu0 %v100_v8  ;;  %v101_v11 = vsub.f32 %v99_v6, %v100_v8  ;;  %v543_v53 = vld [vmem:[%s766_s6] sm:$0xff]  ;;  %s642_s6 = scalar_lea.vmem %s570_s16, 16 }
   0xa   :  { %612 = vmatpush3.xpose.msra.mxu0 %v111_v9  ;;  %613 = vmatprep.mubr.msk.f32.mxu0 %vm667_vm0, %v666_v2  ;;  %v113_v15 = vand.u32 4294901760, %v112_v12  ;;  %v510_v26 = vrot.slane %v506_v21, %v509_v20  ;;  %p643_p0 = scmp.ne.s32.totalorder %s570_s16, %s642_s6  ;;  %p648_p2 = scmp.lt.s32.totalorder %s646_s18, %s642_s6 }
   0xb   :  { %v102_v14 = vand.u32 4294901760, %v101_v11  ;;  %616 = vmatprep.subr.mxu0 %v666_v2  ;;  %497 = vperm.xlu0 %637, %v494_v13  }
   0xc   :  { %vm511_vm3 = vcmp.eq.s32.totalorder %v510_v26, 1  ;;  %p649_p3 = por %p648_p2, %p647_p1 }
   0xd   :  { %594 = vmatmul.mubr.f32.vlgmr.msra.gmra.mrb[0].mxu1 %v102_v14 }
   0xe   :  { %597 = vmatpush3.xpose.msra.mxu1 %v113_v15  ;;  %598 = vmatprep.mubr.msk.f32.mxu1 %vm667_vm0, %v666_v2  ;;  %p650_p4 = pnand %p649_p3, %p643_p0 }
   0xf   :  { %601 = vmatprep.subr.mxu1 %v666_v2 }
  0x11   :  { %614 = vmatmul.mubr.f32.vlgmr.msra.gmra.mrb[0].mxu0 %v98_v4 }
  0x12   :  { %617 = vmatpush3.xpose.msra.mxu0 %v33_v3  ;;  %618 = vmatprep.mubr.msk.f32.mxu0 %vm667_vm0, %v666_v2 }
  0x15   :  { %599 = vmatmul.mubr.f32.vlgmr.msra.gmra.mrb[0].mxu1 %v98_v4 }
  0x16   :  { %602 = vmatpush3.xpose.msra.mxu1 %v110_v5  ;;  %603 = vmatprep.mubr.msk.f32.mxu1 %vm667_vm0, %v666_v2 }
  0x19   :  { %619 = vmatmul.mubr.f32.vlgmr.msra.gmra.mrb[0].mxu0 %v98_v4 }
  0x1d   :  { %604 = vmatmul.mubr.f32.vlgmr.msra.gmra.mrb[0].mxu1 %v99_v6 }
  0x86   :  { %v483_v19 = vpop.permute.xlu0 %482 }
  0x87   :  { %v491_v31 = vadd.f32 %v577_v27, %v483_v19 }
  0x8a   :  { %v498_v25 = vpop.permute.xlu0 %497 }
  0x8b   :  { %vm503_vm2 = vcmp.eq.s32.totalorder %v498_v25, %v578_v24 }
  0x8c   :  { %vm513_vm5 = vmxor %vm503_vm2, %vm669_vm4 }
  0x8d   :  { %vm512_vm6 = vmand %vm503_vm2, %vm511_vm3 }
  0x8e   :  { %vm514_vm8 = vmand %vm513_vm5, %vm511_vm3 }
  0xec   :  { %v474_v22 = vpop.f32.mrb[0].mxu0 }
  0xed   :  { %v620_v23 = vpop.f32.mrb[1].mxu0 }
  0xf0   :  { %v254_v28 = vpop.f32.mrb[0].mxu1 }
  0xf1   :  { %v621_v29 = vadd.f32 %v474_v22, %v254_v28  ;;  %v605_v30 = vpop.f32.mrb[1].mxu1 }
  0xf3   :  { %v492_v32 = vmul.f32 2.0, %v621_v29 }
  0xf5   :  { %v493_v33 = vsub.f32 %v491_v31, %v492_v32 }
  0xf7   :  { %v515_v34 = vsel %vm512_vm6, %v493_v33, -inf  ;;  %v520_v35 = vsel %vm514_vm8, %v493_v33, inf }
  0xf8   :  { %v517_v36 = vsel %vm516_vm7, %v515_v34, -inf  ;;  %v521_v37 = vsel %vm516_vm7, %v520_v35, inf }
  0xf9   :  { %518 = vmax.xlane.f32.xlu1 %v517_v36 }
  0xfd   :  { %522 = vmin.xlane.f32.xlu1 %v521_v37 }
 0x186   :  { %v519_v38 = vpop.xlane.xlu1 %518 }
 0x187   :  { %v524_v39 = vmax.f32 %v519_v38, 1e-16 }
 0x189   :  { %638 = vrsqrt.f32 %v524_v39  ;;  %vm527_vm9 = vcmp.eq.f32.partialorder %v524_v39, inf  ;;  %v530_v47 = vand.u32 2147483648, %v524_v39  ;;  %vm529_vm11 = vcmp.eq.f32.partialorder %v524_v39, 0.0 }
 0x18a   :  { %v523_v40 = vpop.xlane.xlu1 %522 }
 0x18b   :  { %v532_v41 = vmax.f32 %v523_v40, 1e-16 }
 0x18d   :  { %640 = vrsqrt.f32 %v532_v41  ;;  %vm535_vm10 = vcmp.eq.f32.partialorder %v532_v41, inf  ;;  %v538_v48 = vand.u32 2147483648, %v532_v41  ;;  %vm537_vm12 = vcmp.eq.f32.partialorder %v532_v41, 0.0 }
 0x193   :  { %v639_v42 = vpop.eup %638 }
 0x194   :  { %v526_v43 = vmul.f32 %v639_v42, %v524_v39 }
 0x196   :  { %v528_v45 = vsel %vm527_vm9, %v524_v39, %v526_v43 }
 0x197   :  { %v641_v44 = vpop.eup %640  ;;  %v531_v50 = vsel %vm529_vm11, %v530_v47, %v528_v45 }
 0x198   :  { %v534_v46 = vmul.f32 %v641_v44, %v532_v41 }
 0x19a   :  { %v536_v49 = vsel %vm535_vm10, %v532_v41, %v534_v46 }
 0x19b   :  { %v539_v51 = vsel %vm537_vm12, %v538_v48, %v536_v49 }
 0x19c   :  { %v540_v52 = vsub.f32 %v531_v50, %v539_v51 }
 0x19e   :  { %v542_v54 = vmax.f32 %v540_v52, 0.0 }
 0x1a0   :  { %v544_v55 = vmul.f32 %v543_v53, %v542_v54 }
 0x1a2   :  { %v546_v56 = vsel %vm545_vm13, %v544_v55, 0.0 }
 0x1a3   :  { %547 = vadd.xlane.f32.xlu0 %v546_v56 }
 0x230   :  { %v548_v57 = vpop.xlane.xlu0 %547 }
 0x231   :  { %v549_v58 = vrot.slane %v548_v57, 4 }
 0x233   :  { %v550_v59 = vadd.f32 %v549_v58, %v548_v57 }
 0x235   :  { %v551_v60 = vrot.slane %v550_v59, 2 }
 0x237   :  { %v552_v61 = vadd.f32 %v551_v60, %v550_v59 }
 0x239   :  { %v553_v62 = vrot.slane %v552_v61, 1 }
 0x23b   :  { %v554_v63 = vadd.f32 %v553_v62, %v552_v61 }
 0x23d   :  { %630 = vpush %v554_v63 }
 0x26e   :  { %s631_s7 = spop %630 }
 0x26f   :  { %s556_s17 = smul.f32 0.125, %s631_s7 }
 0x271   :  { %v560_v1 = vstv %s556_s17 }
 0x272   :  { %v561_v2 = vsel %vm559_vm14, %v560_v1, 0.0 }
 0x273   :  { %562 = vst [vmem:[#allocation2] sm:$0x1] %v561_v2 }
 0x274   :  { %653 = shalt.err (!%p650_p4)
}
 0x275   :  { %s654_s21 = scalar_lea.hbm %s768_s8, 16 }
 0x276   :  { %p655_p5 = scmp.ne.s32.totalorder %s768_s8, %s654_s21  ;;  %p658_p6 = scmp.lt.u32.totalorder %s654_s21, %s768_s8 }
 0x278   :  { %p660_p7 = pnand %p658_p6, %p655_p5 }
 0x27a   :  { %663 = shalt.err (!%p660_p7)
}
 0x27b   :  { %572 = dma.vmem_to_hbm [thread:$0]  %s570_s16, 16, %s768_s8, [#allocation3]  }
 0x27c   :  { %664 = dma.done.wait [#allocation3], 16  }
 0x27d   :  { %665 = vsyncadd [#allocation3], 4294967280 }
 0x27e   :  { %576 = vsyncpa [#allocation3], 1 }

</bundles_post_ra>
